<compile_context>
chip_gen: v7x
topology: tpu7x:2x2x1
jax: 0.10.0
libtpu: 0.0.40
codegen_flags: <defaults>
</compile_context>

<pallas_src>
import functools

import jax
import jax.numpy as jnp
from jax.experimental import pallas as pl
from jax.experimental.pallas import tpu as pltpu


def _round_up(x: int, m: int) -> int:
    return ((x + m - 1) // m) * m


def _cdiv(a: int, b: int) -> int:
    return (a + b - 1) // b


def _pick_tile(dim_aligned: int, base: int, tile_max: int) -> int:
    """Largest tile (multiple of `base`, <= tile_max) that minimizes padding of
    `dim_aligned`.  Prefers zero padding; ties broken toward the bigger tile."""
    tile_max = max(base, min(tile_max, dim_aligned))
    tile_max = (tile_max // base) * base
    best, best_pad = base, _round_up(dim_aligned, base)
    for cand in range(base, tile_max + 1, base):
        pad = _round_up(dim_aligned, cand)
        if pad < best_pad or (pad == best_pad and cand > best):
            best, best_pad = cand, pad
    return best


# ----------------------------------------------------------------------------
# Kernels
# ----------------------------------------------------------------------------
def _kernel_single_k(x_ref, w_ref, *rest, lr_mul, has_bias):
    """Fast path: whole K contraction in one tile.

    No accumulator scratch, no init/finalize phases — dot, scale, (bias), store.
    """
    if has_bias:
        b_ref, o_ref = rest
    else:
        (o_ref,) = rest
    acc = jnp.dot(x_ref[...], w_ref[...], preferred_element_type=jnp.float32)
    acc = acc * lr_mul
    if has_bias:
        acc = acc + b_ref[...]
    o_ref[...] = acc.astype(o_ref.dtype)


def _kernel_multi_k(x_ref, w_ref, *rest, lr_mul, has_bias):
    """General path: output-stationary K reduction into an f32 VMEM accumulator."""
    if has_bias:
        b_ref, o_ref, acc_ref = rest
    else:
        o_ref, acc_ref = rest
    k = pl.program_id(2)

    @pl.when(k == 0)
    def _():
        acc_ref[...] = jnp.zeros_like(acc_ref)

    acc_ref[...] += jnp.dot(
        x_ref[...], w_ref[...], preferred_element_type=jnp.float32
    )

    @pl.when(k == pl.num_programs(2) - 1)
    def _():
        acc = acc_ref[...] * lr_mul
        if has_bias:
            acc = acc + b_ref[...]
        o_ref[...] = acc.astype(o_ref.dtype)


# ----------------------------------------------------------------------------
# Parameter preparation (hoistable: pay the W transpose / bias scale ONCE)
# ----------------------------------------------------------------------------
def prepare_equal_linear_params(weight, bias, lr_mul=1.0, compute_dtype=None):
    """One-time parameter transform for `equal_linear_prepared`.

    weight (out_dim, in_dim) -> K-major (in_dim, out_dim) in `compute_dtype`.
    bias   (out_dim,) or None -> bias * lr_mul, float32.
    """
    if compute_dtype is None:
        compute_dtype = weight.dtype
    w_t = jnp.asarray(weight).T.astype(compute_dtype)
    b = None if bias is None else jnp.asarray(bias).astype(jnp.float32) * float(lr_mul)
    return w_t, b


# ----------------------------------------------------------------------------
# Forward
# ----------------------------------------------------------------------------
def equal_linear_prepared(
    x,
    w_t,                       # (in_dim, out_dim), already transposed (K-major)
    bias_scaled=None,          # (out_dim,) already multiplied by lr_mul, f32
    lr_mul=1.0,
    *,
    tm=512,
    tn=512,
    tk=1024,
    compute_dtype=None,        # e.g. jnp.bfloat16 on v6e/v7x; default = w_t dtype
    out_dtype=None,
):
    in_dim, out_dim = w_t.shape
    lead = x.shape[:-1]
    assert x.shape[-1] == in_dim

    if compute_dtype is None:
        compute_dtype = w_t.dtype
    if out_dtype is None:
        out_dtype = x.dtype

    x2d = x.reshape(-1, in_dim).astype(compute_dtype)
    w_t = w_t.astype(compute_dtype)
    M = x2d.shape[0]
    has_bias = bias_scaled is not None

    itemsize = jnp.dtype(compute_dtype).itemsize
    base_m = 8 if itemsize >= 4 else (16 if itemsize == 2 else 32)  # sublane packing
    base_l = 128                                                    # lane alignment

    # Minimal hardware-aligned problem dims.
    M_a = _round_up(M, base_m)
    K_a = _round_up(in_dim, base_l)
    N_a = _round_up(out_dim, base_l)

    # Tiles chosen to minimize padding of the aligned dims (not the other way
    # around), capped by the requested maxima / VMEM-friendly defaults.
    tm = _pick_tile(M_a, base_m, tm)
    tk = _pick_tile(K_a, base_l, tk)
    tn = _pick_tile(N_a, base_l, tn)

    # v7x has 2 TensorCores: make sure the "parallel" (i, j) grid has >=2 blocks
    # whenever a dim can be split (costs nothing on 1-TC v5e/v6e).
    if _cdiv(M_a, tm) * _cdiv(N_a, tn) == 1:
        n_units, m_units = N_a // base_l, M_a // base_m
        if n_units >= 2 and (N_a >= M_a or m_units < 2):
            tn = _pick_tile(N_a, base_l, (n_units - 1) * base_l)
        elif m_units >= 2:
            tm = _pick_tile(M_a, base_m, (m_units - 1) * base_m)

    Mp = _round_up(M_a, tm)
    Kp = _round_up(K_a, tk)
    Np = _round_up(N_a, tn)

    # Zero padding of the contraction dim is exact; padded rows/cols are sliced
    # off afterwards.  Skip the pad entirely when shapes already line up.
    if Mp == M and Kp == in_dim:
        x_p = x2d
    else:
        x_p = jnp.pad(x2d, ((0, Mp - M), (0, Kp - in_dim)))
    if Kp == in_dim and Np == out_dim:
        w_p = w_t
    else:
        w_p = jnp.pad(w_t, ((0, Kp - in_dim), (0, Np - out_dim)))

    grid_m, grid_n, grid_k = Mp // tm, Np // tn, Kp // tk
    multi_k = grid_k > 1
    lr_mul = float(lr_mul)

    # Explicit VMEM budget (double-buffered inputs/outputs + acc + bias), so
    # larger tiles compile on v5e (16 MiB default scope) and stay inside v7x's
    # 64 MiB physical VMEM per TensorCore.
    out_bytes = jnp.dtype(out_dtype).itemsize
    vmem_est = 2 * (tm * tk + tk * tn) * itemsize + 2 * tm * tn * out_bytes
    if multi_k:
        vmem_est += tm * tn * 4
    if has_bias:
        vmem_est += 2 * tn * 4
    vmem_limit = int(min(max(vmem_est * 1.4 + (2 << 20), 32 << 20), 64 << 20))

    in_arrays = [x_p, w_p]
    if has_bias:
        b_p = jnp.asarray(bias_scaled).astype(jnp.float32).reshape(1, out_dim)
        if Np != out_dim:
            b_p = jnp.pad(b_p, ((0, 0), (0, Np - out_dim)))
        in_arrays.append(b_p)

    if multi_k:
        kernel = functools.partial(_kernel_multi_k, lr_mul=lr_mul, has_bias=has_bias)
        in_specs = [
            pl.BlockSpec((tm, tk), lambda i, j, k: (i, k)),   # x tile
            pl.BlockSpec((tk, tn), lambda i, j, k: (k, j)),   # W^T tile
        ]
        if has_bias:
            in_specs.append(pl.BlockSpec((1, tn), lambda i, j, k: (0, j)))
        out_specs = pl.BlockSpec((tm, tn), lambda i, j, k: (i, j))
        grid = (grid_m, grid_n, grid_k)
        scratch = [pltpu.VMEM((tm, tn), jnp.float32)]
        dims = ("parallel", "parallel", "arbitrary")
        # NOTE: if the K-step DMA is still exposed for tiny tm, bump pipelining
        # with pipeline_mode=pl.Buffered(3) on the x / W specs.
    else:
        kernel = functools.partial(_kernel_single_k, lr_mul=lr_mul, has_bias=has_bias)
        in_specs = [
            pl.BlockSpec((tm, tk), lambda i, j: (i, 0)),      # x tile (full K)
            pl.BlockSpec((tk, tn), lambda i, j: (0, j)),      # W^T tile (full K)
        ]
        if has_bias:
            in_specs.append(pl.BlockSpec((1, tn), lambda i, j: (0, j)))
        out_specs = pl.BlockSpec((tm, tn), lambda i, j: (i, j))
        grid = (grid_m, grid_n)
        scratch = []
        dims = ("parallel", "parallel")

    out_p = pl.pallas_call(
        kernel,
        out_shape=jax.ShapeDtypeStruct((Mp, Np), out_dtype),
        grid_spec=pltpu.PrefetchScalarGridSpec(
            num_scalar_prefetch=0,
            grid=grid,
            in_specs=in_specs,
            out_specs=out_specs,
            scratch_shapes=scratch,
        ),
        compiler_params=pltpu.CompilerParams(
            dimension_semantics=dims,
            vmem_limit_bytes=vmem_limit,
        ),
    )(*in_arrays)

    out2d = out_p[:M, :out_dim]
    return out2d.reshape(*lead, out_dim)


def equal_linear(x, weight, bias=None, lr_mul=1.0, *, compute_dtype=None, **kw):
    """Convenience wrapper: EqualLinear.forward with PyTorch-layout weight.

    For repeated calls with the same parameters, hoist
    `prepare_equal_linear_params` out of the hot path and call
    `equal_linear_prepared` directly (avoids re-paying the W transpose + pad).
    """
    if compute_dtype is None:
        compute_dtype = x.dtype
    w_t, b = prepare_equal_linear_params(weight, bias, lr_mul, compute_dtype)
    return equal_linear_prepared(
        x, w_t, b, lr_mul, compute_dtype=compute_dtype, out_dtype=x.dtype, **kw
    )


def _reference(x, weight, bias, lr_mul):
    y = x @ (weight * lr_mul).T
    if bias is not None:
        y = y + bias * lr_mul
    return y


if __name__ == "__main__":
    key = jax.random.PRNGKey(0)
    k_x, k_w, k_x2, k_w2, k_b2 = jax.random.split(key, 5)

    # ---- 1) Module-consistent small shapes (single-K fast path, f32) --------
    batch, in_dim, out_dim = 8, 32, 64
    lr_mul = 0.5
    weight = jax.random.normal(k_w, (out_dim, in_dim), dtype=jnp.float32)
    bias = jnp.zeros((out_dim,), dtype=jnp.float32)  # nn.Parameter(torch.zeros(out))
    x = jax.random.normal(k_x, (batch, in_dim), dtype=jnp.float32)

    y = jax.block_until_ready(equal_linear(x, weight, bias, lr_mul=lr_mul))
    y_ref = _reference(x, weight, bias, lr_mul)
    assert y.shape == (batch, out_dim)
    assert jnp.allclose(y, y_ref, atol=1e-5, rtol=1e-5)

    # ---- 2) Multi-K accumulator path, non-tile-multiple dims, leading dims --
    M2_lead, K2, N2 = (2, 96), 640, 256
    lr_mul2 = 0.1
    w2 = jax.random.normal(k_w2, (N2, K2), dtype=jnp.float32)
    b2 = jax.random.normal(k_b2, (N2,), dtype=jnp.float32)
    x2 = jax.random.normal(k_x2, (*M2_lead, K2), dtype=jnp.float32)

    y2 = jax.block_until_ready(
        equal_linear(x2, w2, b2, lr_mul=lr_mul2, tm=128, tn=128, tk=128)
    )
    y2_ref = _reference(x2.reshape(-1, K2), w2, b2, lr_mul2).reshape(*M2_lead, N2)
    assert y2.shape == (*M2_lead, N2)
    assert jnp.allclose(y2, y2_ref, atol=1e-4, rtol=1e-4)

    # ---- 3) bias=None variant (no bias operand / epilogue add) --------------
    y3 = jax.block_until_ready(equal_linear(x2, w2, None, lr_mul=lr_mul2))
    y3_ref = _reference(x2.reshape(-1, K2), w2, None, lr_mul2).reshape(*M2_lead, N2)
    assert jnp.allclose(y3, y3_ref, atol=1e-4, rtol=1e-4)

    # ---- 4) Optional bf16 compute path (v6e/v7x MXU), f32 accumulation ------
    w_t2, b2s = prepare_equal_linear_params(w2, b2, lr_mul2, jnp.bfloat16)
    y4 = jax.block_until_ready(
        equal_linear_prepared(x2, w_t2, b2s, lr_mul2,
                              compute_dtype=jnp.bfloat16, out_dtype=jnp.float32)
    )
    assert y4.shape == (*M2_lead, N2)
    assert jnp.allclose(y4, y2_ref, atol=5e-2, rtol=5e-2)

    print("KERNEL_OK")
</pallas_src>

<mosaic_0001>
module attributes {stable_mosaic.version = 11 : i64} {
  func.func @_kernel_single_k(%arg0: i32, %arg1: i32, %arg2: memref<8x128xf32, #tpu.memory_space<vmem>>, %arg3: memref<128x128xf32, #tpu.memory_space<vmem>>, %arg4: memref<1x128xf32, #tpu.memory_space<vmem>>, %arg5: memref<8x128xf32, #tpu.memory_space<vmem>>) attributes {dimension_semantics = [#tpu.dimension_semantics<parallel>, #tpu.dimension_semantics<parallel>], iteration_bounds = array<i64: 1, 1>, scalar_prefetch = 0 : i64, scratch_operands = 0 : i64, tpu.core_type = #tpu.core_type<tc>, window_params = [{transform_indices = @transform_0, window_bounds = array<i64: 8, 128>}, {transform_indices = @transform_1, window_bounds = array<i64: 128, 128>}, {transform_indices = @transform_2, window_bounds = array<i64: 1, 128>}, {transform_indices = @transform_3, window_bounds = array<i64: 8, 128>}]} {
    %c0 = arith.constant 0 : index
    %c0_0 = arith.constant 0 : index
    %0 = vector.load %arg2[%c0, %c0_0] : memref<8x128xf32, #tpu.memory_space<vmem>>, vector<8x128xf32>
    %c0_1 = arith.constant 0 : index
    %c0_2 = arith.constant 0 : index
    %1 = vector.load %arg3[%c0_1, %c0_2] : memref<128x128xf32, #tpu.memory_space<vmem>>, vector<128x128xf32>
    %cst = arith.constant dense<0.000000e+00> : vector<8x128xf32>
    %2 = tpu.matmul %0, %1, %cst {dimension_numbers = #tpu.dot_dimension_numbers<[1], [0], [0], [1], [0, 0, 1, 1], [], []>} : vector<8x128xf32>, vector<128x128xf32>, vector<8x128xf32> -> vector<8x128xf32>
    %cst_3 = arith.constant 5.000000e-01 : f32
    %3 = vector.broadcast %cst_3 : f32 to vector<8x128xf32>
    %4 = arith.mulf %2, %3 : vector<8x128xf32>
    %c0_4 = arith.constant 0 : index
    %c0_5 = arith.constant 0 : index
    %5 = vector.load %arg4[%c0_4, %c0_5] : memref<1x128xf32, #tpu.memory_space<vmem>>, vector<1x128xf32>
    %6 = vector.broadcast %5 : vector<1x128xf32> to vector<8x128xf32>
    %7 = arith.addf %4, %6 : vector<8x128xf32>
    %c0_6 = arith.constant 0 : index
    %c0_7 = arith.constant 0 : index
    %8 = vector.load %arg5[%c0_6, %c0_7] : memref<8x128xf32, #tpu.memory_space<vmem>>, vector<8x128xf32>
    tpu.vector_store %arg5[%c0_6, %c0_7], %7 {strides = array<i32>} : memref<8x128xf32, #tpu.memory_space<vmem>>, vector<8x128xf32>,
    return
  }
  func.func @transform_0(%arg0: i32, %arg1: i32) -> (i32, i32) {
    %c0_i32 = arith.constant 0 : i32
    %c0_i32_0 = arith.constant 0 : i32
    return %arg0, %c0_i32 : i32, i32
  }
  func.func @transform_1(%arg0: i32, %arg1: i32) -> (i32, i32) {
    %c0_i32 = arith.constant 0 : i32
    %c0_i32_0 = arith.constant 0 : i32
    return %c0_i32, %arg1 : i32, i32
  }
  func.func @transform_2(%arg0: i32, %arg1: i32) -> (i32, i32) {
    %c0_i32 = arith.constant 0 : i32
    %c0_i32_0 = arith.constant 0 : i32
    return %c0_i32, %arg1 : i32, i32
  }
  func.func @transform_3(%arg0: i32, %arg1: i32) -> (i32, i32) {
    %c0_i32 = arith.constant 0 : i32
    return %arg0, %arg1 : i32, i32
  }
}

</mosaic_0001>

<bundles_post_ra>
// kernel: tpu_custom_call.1
= control target key start
LH: loop header
LB: loop body
LE: loop exit
PB: predicated region body
PF: predicated region fallthrough
CT: control target
= control target key end

     0   :  { %8 = vsyncpa [#allocation3], 0  ;;  %s385_s0 = inlined_call_operand.hbm [shape: f32[8,128], index: 0, kind: input, shape index: {}]   ;;  %s386_s1 = inlined_call_operand.hbm [shape: f32[128,128], index: 1, kind: input, shape index: {}]   ;;  %s387_s2 = inlined_call_operand.vmem [shape: f32[1,128], index: 2, kind: input, shape index: {}]   ;;  %s388_s3 = inlined_call_operand.hbm [shape: f32[8,128], index: 3, kind: output, shape index: {}]  }
   0x1   :  { %9 = vsyncpa [#allocation6], 0 }
   0x2   :  { %10 = vsyncpa [#allocation4], 0  ;;  %s311_s12 = smov [#allocation2]   ;;  %s312_s14 = smov [#allocation5]  }
   0x3   :  { %s17_s13 = sshll.u32 %s311_s12, 4  ;;  %s26_s15 = sshll.u32 %s312_s14, 4  ;;  %s18_s13 = int_to_ptr.vmem [resolvable:$true] %s17_s13  ;;  %s339_s15 = int_to_ptr.vmem [resolvable:$true] %s26_s15 }
   0x4   :  { %s239_s18 = scalar_lea.hbm %s385_s0, 128 }
   0x5   :  { %p240_p0 = scmp.ne.s32.totalorder %s385_s0, %s239_s18  ;;  %p243_p1 = scmp.lt.u32.totalorder %s239_s18, %s385_s0 }
   0x7   :  { %p245_p2 = pnand %p243_p1, %p240_p0 }
   0x9   :  { %248 = shalt.err (!%p245_p2)
}
   0xa   :  { %s249_s23 = scalar_lea.vmem %s18_s13, 128  ;;  %p254_p4 = scmp.lt.s32.totalorder %s18_s13, %s18_s13 }
   0xb   :  { %p250_p3 = scmp.ne.s32.totalorder %s18_s13, %s249_s23  ;;  %p255_p5 = scmp.lt.s32.totalorder %s249_s23, %s249_s23 }
   0xd   :  { %p256_p6 = por %p255_p5, %p254_p4 }
   0xf   :  { %p257_p7 = pnand %p256_p6, %p250_p3 }
  0x11   :  { %260 = shalt.err (!%p257_p7)
}
  0x12   :  { %20 = dma.hbm_to_vmem [thread:$0]  %s385_s0, 128, %s18_s13, [#allocation3]  }
  0x13   :  { %s261_s28 = scalar_lea.hbm %s386_s1, 2048 }
  0x14   :  { %p262_p8 = scmp.ne.s32.totalorder %s386_s1, %s261_s28  ;;  %p265_p9 = scmp.lt.u32.totalorder %s261_s28, %s386_s1 }
  0x16   :  { %p267_p10 = pnand %p265_p9, %p262_p8 }
  0x18   :  { %270 = shalt.err (!%p267_p10)
}
  0x19   :  { %s271_s6 = scalar_lea.vmem %s339_s15, 2048  ;;  %p276_p12 = scmp.lt.s32.totalorder %s339_s15, %s339_s15 }
  0x1a   :  { %p272_p11 = scmp.ne.s32.totalorder %s339_s15, %s271_s6  ;;  %p277_p13 = scmp.lt.s32.totalorder %s271_s6, %s271_s6 }
  0x1c   :  { %p278_p0 = por %p277_p13, %p276_p12 }
  0x1e   :  { %p279_p1 = pnand %p278_p0, %p272_p11 }
  0x20   :  { %282 = shalt.err (!%p279_p1)
}
  0x21   :  { %s313_s0 = smov 128   ;;  %s314_s7 = smov 8  }
  0x22   :  { %32 = dma.hbm_to_vmem [thread:$0]  %s386_s1, 2048, %s339_s15, [#allocation6], %s313_s0, %s313_s0, %s314_s7  }
  0x23   :  { %305 = dma.done.wait [#allocation3], 128  }
  0x24   :  { %306 = vsyncadd [#allocation3], 4294967168 }
  0x25   :  { %307 = dma.done.wait [#allocation6], 2048  }
  0x26   :  { %308 = vsyncadd [#allocation6], 4294965248  ;;  %v315_v0 = vmov 0.0|0.0   ;;  %vm316_vm0 = vmmov 0   ;;  %v317_v1 = vmov 0.0   ;;  %v42_v2 = vld [vmem:[#allocation5] sm:$0xff] }
  0x27   :  { %207 = vmatprep.subr.bf16.mxu0 %v315_v0  ;;  %204 = vmatprep.mubr.msk.f32.mxu0 %vm316_vm0, %v317_v1  ;;  %v43_v3 = vld [vmem:[#allocation5 + $0x8] sm:$0xff]  ;;  %v44_v4 = vld [vmem:[#allocation5 + $0x10] sm:$0xff]  ;;  %v45_v6 = vld [vmem:[#allocation5 + $0x18] sm:$0xff]  ;;  %s318_s11 = smov [#allocation7]  }
  0x28   :  { %v208_v5 = vpack.c.bf16 %v43_v3, %v42_v2  ;;  %v211_v7 = vpack.c.bf16 %v45_v6, %v44_v4  ;;  %v46_v8 = vld [vmem:[#allocation5 + $0x20] sm:$0xff]  ;;  %v47_v9 = vld [vmem:[#allocation5 + $0x28] sm:$0xff]  ;;  %v48_v11 = vld [vmem:[#allocation5 + $0x30] sm:$0xff]  ;;  %s144_s12 = sshll.u32 %s318_s11, 4  ;;  %s145_s12 = int_to_ptr.vmem [resolvable:$true] %s144_s12 }
  0x29   :  { %v214_v10 = vpack.c.bf16 %v47_v9, %v46_v8  ;;  %v49_v12 = vld [vmem:[#allocation5 + $0x38] sm:$0xff]  ;;  %v50_v14 = vld [vmem:[#allocation5 + $0x40] sm:$0xff]  ;;  %v51_v15 = vld [vmem:[#allocation5 + $0x48] sm:$0xff]  ;;  %s283_s13 = scalar_lea.vmem %s145_s12, 128  ;;  %p288_p3 = scmp.lt.s32.totalorder %s145_s12, %s145_s12 }
  0x2a   :  { %209 = vmatpush3.bf16.msra.mxu0 %v208_v5  ;;  %v217_v13 = vpack.c.bf16 %v49_v12, %v48_v11  ;;  %v220_v16 = vpack.c.bf16 %v51_v15, %v50_v14  ;;  %v52_v17 = vld [vmem:[#allocation5 + $0x50] sm:$0xff]  ;;  %v53_v18 = vld [vmem:[#allocation5 + $0x58] sm:$0xff]  ;;  %v54_v20 = vld [vmem:[#allocation5 + $0x60] sm:$0xff]  ;;  %p284_p2 = scmp.ne.s32.totalorder %s145_s12, %s283_s13  ;;  %p289_p4 = scmp.lt.s32.totalorder %s283_s13, %s283_s13 }
  0x2b   :  { %210 = vmatprep.subr.bf16.mxu0 %v315_v0  ;;  %v223_v19 = vpack.c.bf16 %v53_v18, %v52_v17  ;;  %v55_v21 = vld [vmem:[#allocation5 + $0x68] sm:$0xff]  ;;  %v56_v23 = vld [vmem:[#allocation5 + $0x70] sm:$0xff]  ;;  %v57_v24 = vld [vmem:[#allocation5 + $0x78] sm:$0xff] }
  0x2c   :  { %v226_v22 = vpack.c.bf16 %v55_v21, %v54_v20  ;;  %v229_v25 = vpack.c.bf16 %v57_v24, %v56_v23  ;;  %v41_v26 = vld [vmem:[#allocation2] sm:$0xff]  ;;  %p290_p5 = por %p289_p4, %p288_p3 }
  0x2d   :  { %v154_v28 = vld [vmem:[%s387_s2] ss:$0 sm:$0xff] }
  0x2e   :  { %212 = vmatpush3.bf16.msra.mxu0 %v211_v7  ;;  %p291_p6 = pnand %p290_p5, %p284_p2 }
  0x2f   :  { %213 = vmatprep.subr.bf16.mxu0 %v315_v0 }
  0x32   :  { %215 = vmatpush3.bf16.msra.mxu0 %v214_v10 }
  0x33   :  { %216 = vmatprep.subr.bf16.mxu0 %v315_v0 }
  0x36   :  { %218 = vmatpush3.bf16.msra.mxu0 %v217_v13 }
  0x37   :  { %219 = vmatprep.subr.bf16.mxu0 %v315_v0 }
  0x3a   :  { %221 = vmatpush3.bf16.msra.mxu0 %v220_v16 }
  0x3b   :  { %222 = vmatprep.subr.bf16.mxu0 %v315_v0 }
  0x3e   :  { %224 = vmatpush3.bf16.msra.mxu0 %v223_v19 }
  0x3f   :  { %225 = vmatprep.subr.bf16.mxu0 %v315_v0 }
  0x42   :  { %227 = vmatpush3.bf16.msra.mxu0 %v226_v22 }
  0x43   :  { %228 = vmatprep.subr.bf16.mxu0 %v315_v0 }
  0x46   :  { %230 = vmatpush3.bf16.msra.mxu0 %v229_v25 }
  0x49   :  { %205 = vmatmul.mubr.f32.vlgmr.msra.gmra.mrb[0].mxu0 %v41_v26 }
 0x11c   :  { %v124_v27 = vpop.f32.mrb[0].mxu0 }
 0x11d   :  { %v128_v29 = vmul.f32 0.5, %v124_v27  ;;  %v206_v30 = vpop.f32.mrb[1].mxu0 }
 0x11f   :  { %v136_v31 = vadd.f32 %v154_v28, %v128_v29 }
 0x121   :  { %137 = vst [vmem:[#allocation7] sm:$0xff] %v136_v31 }
 0x122   :  { %294 = shalt.err (!%p291_p6)
}
 0x123   :  { %s295_s16 = scalar_lea.hbm %s388_s3, 128 }
 0x124   :  { %p296_p7 = scmp.ne.s32.totalorder %s388_s3, %s295_s16  ;;  %p299_p8 = scmp.lt.u32.totalorder %s295_s16, %s388_s3 }
 0x126   :  { %p301_p9 = pnand %p299_p8, %p296_p7 }
 0x128   :  { %304 = shalt.err (!%p301_p9)
}
 0x129   :  { %147 = dma.vmem_to_hbm [thread:$0]  %s145_s12, 128, %s388_s3, [#allocation4]  }
 0x12a   :  { %309 = dma.done.wait [#allocation4], 128  }
 0x12b   :  { %310 = vsyncadd [#allocation4], 4294967168 }
 0x12c   :  { %151 = vsyncpa [#allocation3], 1 }
 0x12d   :  { %152 = vsyncpa [#allocation6], 1 }
 0x12e   :  { %153 = vsyncpa [#allocation4], 1 }

</bundles_post_ra>
